<compile_context>
chip_gen: v7x
topology: tpu7x:2x2x1
jax: 0.10.0
libtpu: 0.0.40
codegen_flags: <defaults>
</compile_context>

<pallas_src>
import functools

import jax
import jax.numpy as jnp
from jax.experimental import pallas as pl
from jax.experimental.pallas import tpu as pltpu

C1 = 0.01 ** 2
C2 = 0.03 ** 2


def _ssim_kernel(col_ref, x_ref, y_ref, o_ref, *, H, W):
    """col_ref: (1, L) int32 column index (w coordinate) of each flattened lane.
    x_ref / y_ref / o_ref: (B, L) blocks, one flattened (H*W) plane per row."""
    B, L = x_ref.shape

    x = x_ref[...].astype(jnp.float32)
    y = y_ref[...].astype(jnp.float32)

    # ---- edge-fix masks: built once, reused for every pooled quantity ------
    col = jnp.broadcast_to(col_ref[...], (B, L))            # w coordinate
    is_w0 = col == 0
    is_wl = col == (W - 1)
    lane = jax.lax.broadcasted_iota(jnp.int32, (B, L), 1)    # flat index h*W+w
    is_h0 = lane < W
    is_hl = lane >= (H - 1) * W

    # Positive (cyclic) roll amounts only.
    up_sh, dn_sh = W, L - W          # roll(+W): value from (h-1, w); roll(L-W): (h+1, w)
    lf_sh, rt_sh = 1, L - 1          # roll(+1): value from (h, w-1); roll(L-1): (h, w+1)

    def vneighbours(a):
        """Up/down neighbours with ReflectionPad2d(1) semantics."""
        a_from_up = pltpu.roll(a, up_sh, axis=1)     # (h-1, w), wraps at h == 0
        a_from_dn = pltpu.roll(a, dn_sh, axis=1)     # (h+1, w), wraps at h == H-1
        up = jnp.where(is_h0, a_from_dn, a_from_up)  # reflect: row 1 above row 0
        dn = jnp.where(is_hl, a_from_up, a_from_dn)  # reflect: row H-2 below row H-1
        return up, dn

    # ---- pass 1 (vertical 3-tap sums): only x and y need shifting ----------
    x_u, x_d = vneighbours(x)
    y_u, y_d = vneighbours(y)

    vx = x_u + x + x_d
    vy = y_u + y + y_d
    vxx = x_u * x_u + x * x + x_d * x_d
    vyy = y_u * y_u + y * y + y_d * y_d
    vxy = x_u * y_u + x * y + x_d * y_d

    # ---- pass 2 (horizontal 3-tap sums) -------------------------------------
    def hsum3(a):
        a_from_l = pltpu.roll(a, lf_sh, axis=1)      # (h, w-1), wraps at w == 0
        a_from_r = pltpu.roll(a, rt_sh, axis=1)      # (h, w+1), wraps at w == W-1
        left = jnp.where(is_w0, a_from_r, a_from_l)  # reflect: col 1 left of col 0
        right = jnp.where(is_wl, a_from_l, a_from_r)  # reflect: col W-2 right of col W-1
        return a + left + right

    inv9 = jnp.float32(1.0 / 9.0)
    mu_x = hsum3(vx) * inv9
    mu_y = hsum3(vy) * inv9
    e_xx = hsum3(vxx) * inv9
    e_yy = hsum3(vyy) * inv9
    e_xy = hsum3(vxy) * inv9

    sigma_x = e_xx - mu_x * mu_x
    sigma_y = e_yy - mu_y * mu_y
    sigma_xy = e_xy - mu_x * mu_y

    ssim_n = (2.0 * mu_x * mu_y + C1) * (2.0 * sigma_xy + C2)
    ssim_d = (mu_x * mu_x + mu_y * mu_y + C1) * (sigma_x + sigma_y + C2)

    # Divide on the EUP (approx reciprocal); C1/C2 keep ssim_d away from 0.
    ratio = ssim_n * pl.reciprocal(ssim_d, approx=True)
    loss = jnp.clip(0.5 * (1.0 - ratio), 0.0, 1.0)
    o_ref[...] = loss.astype(o_ref.dtype)


def _vmem_capacity_bytes():
    """Generation-aware VMEM capacity with a conservative (v7x) fallback."""
    try:
        return int(pltpu.get_tpu_info().vmem_capacity_bytes)
    except Exception:
        return 64 * 1024 * 1024


def _choose_block_planes(nc, plane_elems, vmem_cap):
    """Number of flattened (H*W) planes per grid step."""
    # Working-set model: double-buffered in/out DMA blocks (~6 planes) plus
    # ~14 live f32 temporaries per plane in the body  ->  ~22 f32 planes per
    # block-plane.  Budget ~3/8 of VMEM (≈24 MiB on v7x, ≈48 MiB on v5e/v6e).
    budget = (vmem_cap * 3) // 8
    per_plane = 22 * plane_elems * 4
    b_fit = max(1, budget // per_plane)

    # Keep several grid steps so BlockSpec double-buffering can hide HBM
    # traffic and (on v7x) both TensorCores get a few iterations each.
    if nc >= 64:
        min_steps = 8
    elif nc >= 16:
        min_steps = 4
    elif nc > 8:
        min_steps = 2
    else:
        min_steps = 1
    b = max(1, min(b_fit, nc // min_steps))

    # Mosaic sublane rule: a block's second-to-last dim must be a multiple of
    # 8 or equal to the full array dim.  Ragged last blocks (nc % b != 0) are
    # fine: reads are padded, writes are masked.
    if nc <= 8 or b >= nc:
        return nc
    # Note: for very large planes with nc > 8 this can round b up to 8; such
    # configs would additionally want tiling along H (not needed here).
    return min(nc, max(8, (b // 8) * 8))


def ssim_pallas(x, y):
    """x, y: (N, C, H, W) float. Returns (N, C, H, W) SSIM loss matching the
    PyTorch SSIM module (ReflectionPad2d(1) + 3x3 AvgPool SSIM)."""
    N, C, H, W = x.shape
    assert H >= 2 and W >= 2, "ReflectionPad2d(1) requires H, W >= 2"
    NC = N * C
    L = H * W

    # Layout-preserving reshapes (no HBM shuffle): one flattened plane per row.
    xr = x.reshape(NC, L)
    yr = y.reshape(NC, L)

    # Column (w) coordinate of every flattened lane; the kernel builds its
    # reflect edge-fix masks from this once per block.
    col = (jnp.arange(L, dtype=jnp.int32) % W).reshape(1, L)

    vmem_cap = _vmem_capacity_bytes()
    B = _choose_block_planes(NC, L, vmem_cap)
    grid = (pl.cdiv(NC, B),)
    vmem_limit = int(min(vmem_cap * 3 // 4, 96 * 1024 * 1024))

    itemsize = jnp.dtype(x.dtype).itemsize
    cost = pl.CostEstimate(
        flops=72 * NC * L,
        transcendentals=NC * L,
        bytes_accessed=3 * NC * L * itemsize + L * 4,
    )

    kernel = functools.partial(_ssim_kernel, H=H, W=W)

    out = pl.pallas_call(
        kernel,
        out_shape=jax.ShapeDtypeStruct((NC, L), x.dtype),
        grid=grid,
        in_specs=[
            pl.BlockSpec((1, L), lambda i: (0, 0)),   # col (constant per step)
            pl.BlockSpec((B, L), lambda i: (i, 0)),   # x planes
            pl.BlockSpec((B, L), lambda i: (i, 0)),   # y planes
        ],
        out_specs=pl.BlockSpec((B, L), lambda i: (i, 0)),
        compiler_params=pltpu.CompilerParams(
            dimension_semantics=("parallel",),
            vmem_limit_bytes=vmem_limit,
        ),
        cost_estimate=cost,
    )(col, xr, yr)

    return out.reshape(N, C, H, W)


def ssim_ref(x, y):
    """Pure-JAX reference mirroring the PyTorch module, for sanity checking."""
    pad = ((0, 0), (0, 0), (1, 1), (1, 1))
    xp = jnp.pad(x, pad, mode="reflect")
    yp = jnp.pad(y, pad, mode="reflect")
    H, W = x.shape[2], x.shape[3]

    def pool(a):
        acc = jnp.zeros_like(a[:, :, :H, :W])
        for di in range(3):
            for dj in range(3):
                acc = acc + a[:, :, di:di + H, dj:dj + W]
        return acc / 9.0

    mu_x = pool(xp)
    mu_y = pool(yp)
    sigma_x = pool(xp * xp) - mu_x ** 2
    sigma_y = pool(yp * yp) - mu_y ** 2
    sigma_xy = pool(xp * yp) - mu_x * mu_y
    ssim_n = (2 * mu_x * mu_y + C1) * (2 * sigma_xy + C2)
    ssim_d = (mu_x ** 2 + mu_y ** 2 + C1) * (sigma_x + sigma_y + C2)
    return jnp.clip((1 - ssim_n / ssim_d) / 2, 0.0, 1.0)


if __name__ == "__main__":
    key = jax.random.PRNGKey(0)
    kx, ky = jax.random.split(key)
    N, C, H, W = 2, 4, 16, 16
    x = jax.random.uniform(kx, (N, C, H, W), dtype=jnp.float32)
    y = jax.random.uniform(ky, (N, C, H, W), dtype=jnp.float32)

    out = jax.block_until_ready(ssim_pallas(x, y))
    ref = ssim_ref(x, y)

    assert out.shape == (N, C, H, W)
    # Tolerance accommodates the EUP approximate reciprocal (~1e-3 rel err).
    assert jnp.allclose(out, ref, atol=5e-3, rtol=5e-3)

    print("KERNEL_OK")
</pallas_src>

<mosaic_0001>
module attributes {stable_mosaic.version = 11 : i64} {
  func.func @_ssim_kernel(%arg0: i32, %arg1: memref<1x256xi32, #tpu.memory_space<vmem>>, %arg2: memref<8x256xf32, #tpu.memory_space<vmem>>, %arg3: memref<8x256xf32, #tpu.memory_space<vmem>>, %arg4: memref<8x256xf32, #tpu.memory_space<vmem>>) attributes {dimension_semantics = [#tpu.dimension_semantics<parallel>], iteration_bounds = array<i64: 1>, scalar_prefetch = 0 : i64, scratch_operands = 0 : i64, tpu.core_type = #tpu.core_type<tc>, window_params = [{pipeline_mode = #tpu.pipeline_mode<synchronous>, transform_indices = @transform_0, window_bounds = array<i64: 1, 256>}, {transform_indices = @transform_1, window_bounds = array<i64: 8, 256>}, {transform_indices = @transform_2, window_bounds = array<i64: 8, 256>}, {transform_indices = @transform_3, window_bounds = array<i64: 8, 256>}]} {
    %c0 = arith.constant 0 : index
    %c0_0 = arith.constant 0 : index
    %0 = vector.load %arg2[%c0, %c0_0] : memref<8x256xf32, #tpu.memory_space<vmem>>, vector<8x256xf32>
    %c0_1 = arith.constant 0 : index
    %c0_2 = arith.constant 0 : index
    %1 = vector.load %arg3[%c0_1, %c0_2] : memref<8x256xf32, #tpu.memory_space<vmem>>, vector<8x256xf32>
    %c0_3 = arith.constant 0 : index
    %c0_4 = arith.constant 0 : index
    %2 = vector.load %arg1[%c0_3, %c0_4] : memref<1x256xi32, #tpu.memory_space<vmem>>, vector<1x256xi32>
    %3 = vector.shape_cast %2 : vector<1x256xi32> to vector<1x256xi32>
    %4 = vector.broadcast %3 : vector<1x256xi32> to vector<8x256xi32>
    %c0_i32 = arith.constant 0 : i32
    %5 = vector.broadcast %c0_i32 : i32 to vector<8x256xi32>
    %6 = arith.cmpi eq, %4, %5 : vector<8x256xi32>
    %c15_i32 = arith.constant 15 : i32
    %7 = vector.broadcast %c15_i32 : i32 to vector<8x256xi32>
    %8 = arith.cmpi eq, %4, %7 : vector<8x256xi32>
    %9 = tpu.iota {dimensions = array<i32: 1>} : vector<8x256xi32>
    %c16_i32 = arith.constant 16 : i32
    %10 = vector.broadcast %c16_i32 : i32 to vector<8x256xi32>
    %11 = arith.cmpi slt, %9, %10 : vector<8x256xi32>
    %c240_i32 = arith.constant 240 : i32
    %12 = vector.broadcast %c240_i32 : i32 to vector<8x256xi32>
    %13 = arith.cmpi sge, %9, %12 : vector<8x256xi32>
    %c16_i32_5 = arith.constant 16 : i32
    %14 = tpu.dynamic_rotate %0 by %c16_i32_5 dim 1 : vector<8x256xf32>, i32 -> vector<8x256xf32>
    %c240_i32_6 = arith.constant 240 : i32
    %15 = tpu.dynamic_rotate %0 by %c240_i32_6 dim 1 : vector<8x256xf32>, i32 -> vector<8x256xf32>
    %16 = arith.select %11, %15, %14 : vector<8x256xi1>, vector<8x256xf32>
    %17 = arith.select %13, %14, %15 : vector<8x256xi1>, vector<8x256xf32>
    %c16_i32_7 = arith.constant 16 : i32
    %18 = tpu.dynamic_rotate %1 by %c16_i32_7 dim 1 : vector<8x256xf32>, i32 -> vector<8x256xf32>
    %c240_i32_8 = arith.constant 240 : i32
    %19 = tpu.dynamic_rotate %1 by %c240_i32_8 dim 1 : vector<8x256xf32>, i32 -> vector<8x256xf32>
    %20 = arith.select %11, %19, %18 : vector<8x256xi1>, vector<8x256xf32>
    %21 = arith.select %13, %18, %19 : vector<8x256xi1>, vector<8x256xf32>
    %22 = arith.addf %16, %0 : vector<8x256xf32>
    %23 = arith.addf %22, %17 : vector<8x256xf32>
    %24 = arith.addf %20, %1 : vector<8x256xf32>
    %25 = arith.addf %24, %21 : vector<8x256xf32>
    %26 = arith.mulf %16, %16 : vector<8x256xf32>
    %27 = arith.mulf %0, %0 : vector<8x256xf32>
    %28 = arith.addf %26, %27 : vector<8x256xf32>
    %29 = arith.mulf %17, %17 : vector<8x256xf32>
    %30 = arith.addf %28, %29 : vector<8x256xf32>
    %31 = arith.mulf %20, %20 : vector<8x256xf32>
    %32 = arith.mulf %1, %1 : vector<8x256xf32>
    %33 = arith.addf %31, %32 : vector<8x256xf32>
    %34 = arith.mulf %21, %21 : vector<8x256xf32>
    %35 = arith.addf %33, %34 : vector<8x256xf32>
    %36 = arith.mulf %16, %20 : vector<8x256xf32>
    %37 = arith.mulf %0, %1 : vector<8x256xf32>
    %38 = arith.addf %36, %37 : vector<8x256xf32>
    %39 = arith.mulf %17, %21 : vector<8x256xf32>
    %40 = arith.addf %38, %39 : vector<8x256xf32>
    %c1_i32 = arith.constant 1 : i32
    %41 = tpu.dynamic_rotate %23 by %c1_i32 dim 1 : vector<8x256xf32>, i32 -> vector<8x256xf32>
    %c255_i32 = arith.constant 255 : i32
    %42 = tpu.dynamic_rotate %23 by %c255_i32 dim 1 : vector<8x256xf32>, i32 -> vector<8x256xf32>
    %43 = arith.select %6, %42, %41 : vector<8x256xi1>, vector<8x256xf32>
    %44 = arith.select %8, %41, %42 : vector<8x256xi1>, vector<8x256xf32>
    %45 = arith.addf %23, %43 : vector<8x256xf32>
    %46 = arith.addf %45, %44 : vector<8x256xf32>
    %cst = arith.constant 0.111111112 : f32
    %47 = vector.broadcast %cst : f32 to vector<8x256xf32>
    %48 = arith.mulf %46, %47 : vector<8x256xf32>
    %c1_i32_9 = arith.constant 1 : i32
    %49 = tpu.dynamic_rotate %25 by %c1_i32_9 dim 1 : vector<8x256xf32>, i32 -> vector<8x256xf32>
    %c255_i32_10 = arith.constant 255 : i32
    %50 = tpu.dynamic_rotate %25 by %c255_i32_10 dim 1 : vector<8x256xf32>, i32 -> vector<8x256xf32>
    %51 = arith.select %6, %50, %49 : vector<8x256xi1>, vector<8x256xf32>
    %52 = arith.select %8, %49, %50 : vector<8x256xi1>, vector<8x256xf32>
    %53 = arith.addf %25, %51 : vector<8x256xf32>
    %54 = arith.addf %53, %52 : vector<8x256xf32>
    %cst_11 = arith.constant 0.111111112 : f32
    %55 = vector.broadcast %cst_11 : f32 to vector<8x256xf32>
    %56 = arith.mulf %54, %55 : vector<8x256xf32>
    %c1_i32_12 = arith.constant 1 : i32
    %57 = tpu.dynamic_rotate %30 by %c1_i32_12 dim 1 : vector<8x256xf32>, i32 -> vector<8x256xf32>
    %c255_i32_13 = arith.constant 255 : i32
    %58 = tpu.dynamic_rotate %30 by %c255_i32_13 dim 1 : vector<8x256xf32>, i32 -> vector<8x256xf32>
    %59 = arith.select %6, %58, %57 : vector<8x256xi1>, vector<8x256xf32>
    %60 = arith.select %8, %57, %58 : vector<8x256xi1>, vector<8x256xf32>
    %61 = arith.addf %30, %59 : vector<8x256xf32>
    %62 = arith.addf %61, %60 : vector<8x256xf32>
    %cst_14 = arith.constant 0.111111112 : f32
    %63 = vector.broadcast %cst_14 : f32 to vector<8x256xf32>
    %64 = arith.mulf %62, %63 : vector<8x256xf32>
    %c1_i32_15 = arith.constant 1 : i32
    %65 = tpu.dynamic_rotate %35 by %c1_i32_15 dim 1 : vector<8x256xf32>, i32 -> vector<8x256xf32>
    %c255_i32_16 = arith.constant 255 : i32
    %66 = tpu.dynamic_rotate %35 by %c255_i32_16 dim 1 : vector<8x256xf32>, i32 -> vector<8x256xf32>
    %67 = arith.select %6, %66, %65 : vector<8x256xi1>, vector<8x256xf32>
    %68 = arith.select %8, %65, %66 : vector<8x256xi1>, vector<8x256xf32>
    %69 = arith.addf %35, %67 : vector<8x256xf32>
    %70 = arith.addf %69, %68 : vector<8x256xf32>
    %cst_17 = arith.constant 0.111111112 : f32
    %71 = vector.broadcast %cst_17 : f32 to vector<8x256xf32>
    %72 = arith.mulf %70, %71 : vector<8x256xf32>
    %c1_i32_18 = arith.constant 1 : i32
    %73 = tpu.dynamic_rotate %40 by %c1_i32_18 dim 1 : vector<8x256xf32>, i32 -> vector<8x256xf32>
    %c255_i32_19 = arith.constant 255 : i32
    %74 = tpu.dynamic_rotate %40 by %c255_i32_19 dim 1 : vector<8x256xf32>, i32 -> vector<8x256xf32>
    %75 = arith.select %6, %74, %73 : vector<8x256xi1>, vector<8x256xf32>
    %76 = arith.select %8, %73, %74 : vector<8x256xi1>, vector<8x256xf32>
    %77 = arith.addf %40, %75 : vector<8x256xf32>
    %78 = arith.addf %77, %76 : vector<8x256xf32>
    %cst_20 = arith.constant 0.111111112 : f32
    %79 = vector.broadcast %cst_20 : f32 to vector<8x256xf32>
    %80 = arith.mulf %78, %79 : vector<8x256xf32>
    %81 = arith.mulf %48, %48 : vector<8x256xf32>
    %82 = arith.subf %64, %81 : vector<8x256xf32>
    %83 = arith.mulf %56, %56 : vector<8x256xf32>
    %84 = arith.subf %72, %83 : vector<8x256xf32>
    %85 = arith.mulf %48, %56 : vector<8x256xf32>
    %86 = arith.subf %80, %85 : vector<8x256xf32>
    %cst_21 = arith.constant 2.000000e+00 : f32
    %87 = vector.broadcast %cst_21 : f32 to vector<8x256xf32>
    %88 = arith.mulf %87, %48 : vector<8x256xf32>
    %89 = arith.mulf %88, %56 : vector<8x256xf32>
    %cst_22 = arith.constant 9.99999974E-5 : f32
    %90 = vector.broadcast %cst_22 : f32 to vector<8x256xf32>
    %91 = arith.addf %89, %90 : vector<8x256xf32>
    %cst_23 = arith.constant 2.000000e+00 : f32
    %92 = vector.broadcast %cst_23 : f32 to vector<8x256xf32>
    %93 = arith.mulf %92, %86 : vector<8x256xf32>
    %cst_24 = arith.constant 8.99999984E-4 : f32
    %94 = vector.broadcast %cst_24 : f32 to vector<8x256xf32>
    %95 = arith.addf %93, %94 : vector<8x256xf32>
    %96 = arith.mulf %91, %95 : vector<8x256xf32>
    %97 = arith.mulf %48, %48 : vector<8x256xf32>
    %98 = arith.mulf %56, %56 : vector<8x256xf32>
    %99 = arith.addf %97, %98 : vector<8x256xf32>
    %cst_25 = arith.constant 9.99999974E-5 : f32
    %100 = vector.broadcast %cst_25 : f32 to vector<8x256xf32>
    %101 = arith.addf %99, %100 : vector<8x256xf32>
    %102 = arith.addf %82, %84 : vector<8x256xf32>
    %cst_26 = arith.constant 8.99999984E-4 : f32
    %103 = vector.broadcast %cst_26 : f32 to vector<8x256xf32>
    %104 = arith.addf %102, %103 : vector<8x256xf32>
    %105 = arith.mulf %101, %104 : vector<8x256xf32>
    %106 = tpu.reciprocal %105 {approx = true} : vector<8x256xf32> -> vector<8x256xf32>
    %107 = arith.mulf %96, %106 : vector<8x256xf32>
    %cst_27 = arith.constant 1.000000e+00 : f32
    %108 = vector.broadcast %cst_27 : f32 to vector<8x256xf32>
    %109 = arith.subf %108, %107 : vector<8x256xf32>
    %cst_28 = arith.constant 5.000000e-01 : f32
    %110 = vector.broadcast %cst_28 : f32 to vector<8x256xf32>
    %111 = arith.mulf %110, %109 : vector<8x256xf32>
    %cst_29 = arith.constant 0.000000e+00 : f32
    %cst_30 = arith.constant 1.000000e+00 : f32
    %112 = vector.broadcast %cst_29 : f32 to vector<8x256xf32>
    %113 = arith.maximumf %112, %111 : vector<8x256xf32>
    %114 = vector.broadcast %cst_30 : f32 to vector<8x256xf32>
    %115 = arith.minimumf %114, %113 : vector<8x256xf32>
    %c0_31 = arith.constant 0 : index
    %c0_32 = arith.constant 0 : index
    %116 = vector.load %arg4[%c0_31, %c0_32] : memref<8x256xf32, #tpu.memory_space<vmem>>, vector<8x256xf32>
    tpu.vector_store %arg4[%c0_31, %c0_32], %115 {strides = array<i32>} : memref<8x256xf32, #tpu.memory_space<vmem>>, vector<8x256xf32>,
    return
  }
  func.func @transform_0(%arg0: i32) -> (i32, i32) {
    %c0_i32 = arith.constant 0 : i32
    %c0_i32_0 = arith.constant 0 : i32
    %c0_i32_1 = arith.constant 0 : i32
    return %c0_i32, %c0_i32_0 : i32, i32
  }
  func.func @transform_1(%arg0: i32) -> (i32, i32) {
    %c0_i32 = arith.constant 0 : i32
    %c0_i32_0 = arith.constant 0 : i32
    return %arg0, %c0_i32 : i32, i32
  }
  func.func @transform_2(%arg0: i32) -> (i32, i32) {
    %c0_i32 = arith.constant 0 : i32
    %c0_i32_0 = arith.constant 0 : i32
    return %arg0, %c0_i32 : i32, i32
  }
  func.func @transform_3(%arg0: i32) -> (i32, i32) {
    %c0_i32 = arith.constant 0 : i32
    %c0_i32_0 = arith.constant 0 : i32
    return %arg0, %c0_i32 : i32, i32
  }
}

</mosaic_0001>

<bundles_post_ra>
// kernel: tpu_custom_call.1
= control target key start
LH: loop header
LB: loop body
LE: loop exit
PB: predicated region body
PF: predicated region fallthrough
CT: control target
= control target key end

     0   :  { %8 = vsyncpa [#allocation3], 0  ;;  %s743_s0 = inlined_call_operand.hbm [shape: s32[1,256], index: 0, kind: input, shape index: {}]   ;;  %s744_s1 = inlined_call_operand.hbm [shape: f32[8,256], index: 1, kind: input, shape index: {}]   ;;  %s745_s2 = inlined_call_operand.hbm [shape: f32[8,256], index: 2, kind: input, shape index: {}]   ;;  %s746_s3 = inlined_call_operand.hbm [shape: f32[8,256], index: 3, kind: output, shape index: {}]  }
   0x1   :  { %9 = vsyncpa [#allocation6], 0 }
   0x2   :  { %10 = vsyncpa [#allocation4], 0  ;;  %s427_s12 = smov [#allocation5]   ;;  %s428_s14 = smov [#allocation2]  }
   0x3   :  { %s27_s13 = sshll.u32 %s427_s12, 4  ;;  %s17_s15 = sshll.u32 %s428_s14, 4  ;;  %s28_s13 = int_to_ptr.vmem [resolvable:$true] %s27_s13  ;;  %s18_s15 = int_to_ptr.vmem [resolvable:$true] %s17_s15 }
   0x4   :  { %s333_s18 = scalar_lea.hbm %s744_s1, 256 }
   0x5   :  { %p334_p0 = scmp.ne.s32.totalorder %s744_s1, %s333_s18  ;;  %p337_p1 = scmp.lt.u32.totalorder %s333_s18, %s744_s1 }
   0x7   :  { %p339_p2 = pnand %p337_p1, %p334_p0 }
   0x9   :  { %342 = shalt.err (!%p339_p2)
}
   0xa   :  { %s343_s23 = scalar_lea.vmem %s28_s13, 256  ;;  %p348_p4 = scmp.lt.s32.totalorder %s28_s13, %s28_s13 }
   0xb   :  { %p344_p3 = scmp.ne.s32.totalorder %s28_s13, %s343_s23  ;;  %p349_p5 = scmp.lt.s32.totalorder %s343_s23, %s343_s23 }
   0xd   :  { %p350_p6 = por %p349_p5, %p348_p4 }
   0xf   :  { %p351_p7 = pnand %p350_p6, %p344_p3 }
  0x11   :  { %354 = shalt.err (!%p351_p7)
}
  0x12   :  { %30 = dma.hbm_to_vmem [thread:$0]  %s744_s1, 256, %s28_s13, [#allocation6]  }
  0x13   :  { %s355_s28 = scalar_lea.hbm %s743_s0, 32 }
  0x14   :  { %p356_p8 = scmp.ne.s32.totalorder %s743_s0, %s355_s28  ;;  %p359_p9 = scmp.lt.u32.totalorder %s355_s28, %s743_s0 }
  0x16   :  { %p361_p10 = pnand %p359_p9, %p356_p8 }
  0x18   :  { %364 = shalt.err (!%p361_p10)
}
  0x19   :  { %s365_s6 = scalar_lea.vmem %s18_s15, 32  ;;  %p370_p12 = scmp.lt.s32.totalorder %s18_s15, %s18_s15 }
  0x1a   :  { %p366_p11 = scmp.ne.s32.totalorder %s18_s15, %s365_s6  ;;  %p371_p13 = scmp.lt.s32.totalorder %s365_s6, %s365_s6 }
  0x1c   :  { %p372_p0 = por %p371_p13, %p370_p12 }
  0x1e   :  { %p373_p1 = pnand %p372_p0, %p366_p11 }
  0x20   :  { %376 = shalt.err (!%p373_p1)
}
  0x21   :  { %20 = dma.hbm_to_vmem [thread:$0]  %s743_s0, 32, %s18_s15, [#allocation3]  }
  0x22   :  { %s429_s8 = smov [#allocation7]   ;;  %s377_s12 = scalar_lea.hbm %s745_s2, 256 }
  0x23   :  { %s37_s9 = sshll.u32 %s429_s8, 4  ;;  %p378_p2 = scmp.ne.s32.totalorder %s745_s2, %s377_s12  ;;  %s38_s9 = int_to_ptr.vmem [resolvable:$true] %s37_s9 }
  0x24   :  { %p381_p3 = scmp.lt.u32.totalorder %s377_s12, %s745_s2 }
  0x26   :  { %p383_p4 = pnand %p381_p3, %p378_p2 }
  0x28   :  { %386 = shalt.err (!%p383_p4)
}
  0x29   :  { %s387_s18 = scalar_lea.vmem %s38_s9, 256  ;;  %p392_p6 = scmp.lt.s32.totalorder %s38_s9, %s38_s9 }
  0x2a   :  { %p388_p5 = scmp.ne.s32.totalorder %s38_s9, %s387_s18  ;;  %p393_p7 = scmp.lt.s32.totalorder %s387_s18, %s387_s18 }
  0x2c   :  { %p394_p8 = por %p393_p7, %p392_p6 }
  0x2e   :  { %p395_p9 = pnand %p394_p8, %p388_p5 }
  0x30   :  { %398 = shalt.err (!%p395_p9)
}
  0x31   :  { %40 = dma.hbm_to_vmem [thread:$0]  %s745_s2, 256, %s38_s9, [#allocation6]  }
  0x32   :  { %421 = dma.done.wait [#allocation3], 32  }
  0x33   :  { %422 = vsyncadd [#allocation3], 4294967264 }
  0x34   :  { %423 = dma.done.wait [#allocation6], 512  }
  0x35   :  { %424 = vsyncadd [#allocation6], 4294966784  ;;  %v491_v0 = vld [vmem:[#allocation5] sm:$0xff]  ;;  %s430_s19 = smov 112   ;;  %s431_s20 = smov 16   ;;  %v495_v1 = vld [vmem:[#allocation5 + $0x8] sm:$0xff]  ;;  %v55_v4 = vlaneseq }
  0x36   :  { %80 = vrot.lane.b32.xlu1 %v491_v0, %s430_s19  ;;  %74 = vrot.lane.b32.xlu0 %v491_v0, %s431_s20  ;;  %v499_v2 = vld [vmem:[#allocation7 + $0x8] sm:$0xff]  ;;  %v501_v3 = vld [vmem:[#allocation7] sm:$0xff]  ;;  %s432_s2 = smov 1   ;;  %s433_s21 = smov 127   ;;  %v118_v35 = vmul.f32 %v495_v1, %v495_v1  ;;  %v117_v38 = vmul.f32 %v491_v0, %v491_v0 }
  0x37   :  { %v508_v5 = vand.u32 127, %v55_v4  ;;  %v127_v46 = vmul.f32 %v501_v3, %v501_v3  ;;  %v128_v48 = vmul.f32 %v499_v2, %v499_v2  ;;  %v137_v56 = vmul.f32 %v501_v3, %v491_v0  ;;  %s434_s22 = smov [#allocation8]  }
  0x38   :  { %v138_v58 = vmul.f32 %v499_v2, %v495_v1  ;;  %s311_s23 = sshll.u32 %s434_s22, 4  ;;  %s312_s23 = int_to_ptr.vmem [resolvable:$true] %s311_s23 }
  0x39   :  { %v69_v6 = vadd.s32 128, %v508_v5  ;;  %vm84_vm0 = vcmp.lt.s32.totalorder %v508_v5, 112  ;;  %vm70_vm1 = vcmp.lt.s32.totalorder %v508_v5, 16  ;;  %vm156_vm3 = vcmp.lt.s32.totalorder %v508_v5, 127  ;;  %s399_s24 = scalar_lea.vmem %s312_s23, 256  ;;  %p404_p11 = scmp.lt.s32.totalorder %s312_s23, %s312_s23 }
  0x3a   :  { %82 = vrot.lane.b32.xlu1 %v495_v1, %s430_s19  ;;  %76 = vrot.lane.b32.xlu0 %v495_v1, %s431_s20  ;;  %vm149_vm4 = vcmp.lt.s32.totalorder %v508_v5, 1  ;;  %p400_p10 = scmp.ne.s32.totalorder %s312_s23, %s399_s24  ;;  %p405_p12 = scmp.lt.s32.totalorder %s399_s24, %s399_s24 }
  0x3b   :  { %vm73_vm2 = vcmp.ge.s32.totalorder %v69_v6, 240 }
  0x3c   :  { %p406_p13 = por %p405_p12, %p404_p11 }
  0x3e   :  { %93 = vrot.lane.b32.xlu1 %v499_v2, %s431_s20  ;;  %91 = vrot.lane.b32.xlu0 %v501_v3, %s431_s20  ;;  %p407_p0 = pnand %p406_p13, %p400_p10 }
  0x42   :  { %99 = vrot.lane.b32.xlu1 %v499_v2, %s430_s19  ;;  %97 = vrot.lane.b32.xlu0 %v501_v3, %s430_s19 }
  0xa8   :  { %v81_v7 = vpop.permute.xlu1 %80  ;;  %v75_v8 = vpop.permute.xlu0 %74 }
  0xac   :  { %v83_v9 = vpop.permute.xlu1 %82  ;;  %v77_v10 = vpop.permute.xlu0 %76 }
  0xad   :  { %v515_v11 = vsel %vm84_vm0, %v81_v7, %v83_v9  ;;  %v86_v12 = vsel %vm84_vm0, %v83_v9, %v81_v7  ;;  %v78_v13 = vsel %vm70_vm1, %v75_v8, %v77_v10  ;;  %v79_v14 = vsel %vm70_vm1, %v77_v10, %v75_v8  ;;  %v54_v10 = vld [vmem:[#allocation2] sm:$0x3] }
  0xae   :  { %v87_v15 = vsel %vm70_vm1, %v515_v11, %v79_v14  ;;  %v90_v16 = vsel %vm73_vm2, %v78_v13, %v86_v12  ;;  %v108_v17 = vadd.f32 %v78_v13, %v495_v1  ;;  %v116_v34 = vmul.f32 %v78_v13, %v78_v13 }
  0xaf   :  { %v107_v18 = vadd.f32 %v87_v15, %v491_v0  ;;  %v115_v36 = vmul.f32 %v87_v15, %v87_v15  ;;  %v122_v40 = vmul.f32 %v90_v16, %v90_v16  ;;  %v121_v42 = vmul.f32 %v515_v11, %v515_v11 }
  0xb0   :  { %v94_v19 = vpop.permute.xlu1 %93  ;;  %v92_v20 = vpop.permute.xlu0 %91  ;;  %v529_v21 = vadd.f32 %v108_v17, %v90_v16  ;;  %v120_v39 = vadd.f32 %v118_v35, %v116_v34 }
  0xb1   :  { %v532_v22 = vadd.f32 %v107_v18, %v515_v11  ;;  %v95_v23 = vsel %vm70_vm1, %v92_v20, %v94_v19  ;;  %v96_v26 = vsel %vm70_vm1, %v94_v19, %v92_v20  ;;  %v119_v41 = vadd.f32 %v117_v38, %v115_v36 }
  0xb2   :  { %147 = vrot.lane.b32.xlu1 %v529_v21, %s432_s2  ;;  %v112_v27 = vadd.f32 %v95_v23, %v499_v2  ;;  %v573_v43 = vadd.f32 %v122_v40, %v120_v39  ;;  %v126_v47 = vmul.f32 %v95_v23, %v95_v23  ;;  %v136_v57 = vmul.f32 %v95_v23, %v78_v13 }
  0xb3   :  { %145 = vrot.lane.b32.xlu0 %v532_v22, %s432_s2  ;;  %v575_v44 = vadd.f32 %v121_v42, %v119_v41 }
  0xb4   :  { %v100_v24 = vpop.permute.xlu1 %99  ;;  %v98_v25 = vpop.permute.xlu0 %97  ;;  %v130_v51 = vadd.f32 %v128_v48, %v126_v47  ;;  %v140_v61 = vadd.f32 %v138_v58, %v136_v57 }
  0xb5   :  { %v101_v28 = vsel %vm84_vm0, %v98_v25, %v100_v24  ;;  %v102_v29 = vsel %vm84_vm0, %v100_v24, %v98_v25 }
  0xb6   :  { %v103_v30 = vsel %vm70_vm1, %v101_v28, %v96_v26  ;;  %v106_v31 = vsel %vm73_vm2, %v95_v23, %v102_v29  ;;  %154 = vrot.lane.b32.xlu1 %v529_v21, %s433_s21  ;;  %v131_v52 = vmul.f32 %v101_v28, %v101_v28  ;;  %v141_v62 = vmul.f32 %v101_v28, %v515_v11 }
  0xb7   :  { %152 = vrot.lane.b32.xlu0 %v532_v22, %s433_s21  ;;  %v554_v32 = vadd.f32 %v112_v27, %v106_v31  ;;  %v111_v33 = vadd.f32 %v103_v30, %v501_v3  ;;  %v125_v45 = vmul.f32 %v103_v30, %v103_v30  ;;  %v132_v49 = vmul.f32 %v106_v31, %v106_v31 }
  0xb8   :  { %v135_v55 = vmul.f32 %v103_v30, %v87_v15  ;;  %v142_v59 = vmul.f32 %v106_v31, %v90_v16  ;;  %v56_v3 = vshrl.u32 %v55_v4, 7 }
  0xb9   :  { %v559_v37 = vadd.f32 %v111_v33, %v101_v28  ;;  %v129_v50 = vadd.f32 %v127_v46, %v125_v45  ;;  %v589_v53 = vadd.f32 %v132_v49, %v130_v51 }
  0xba   :  { %171 = vrot.lane.b32.xlu1 %v554_v32, %s432_s2  ;;  %v139_v60 = vadd.f32 %v137_v56, %v135_v55  ;;  %v606_v63 = vadd.f32 %v142_v59, %v140_v61  ;;  %v57_v8 = vsub.s32 0, %v56_v3  ;;  %v61_v9 = vsub.s32 1, %v56_v3 }
  0xbb   :  { %169 = vrot.lane.b32.xlu0 %v559_v37, %s432_s2  ;;  %v591_v54 = vadd.f32 %v131_v52, %v129_v50 }
  0xbc   :  { %v608_v0 = vadd.f32 %v141_v62, %v139_v60  ;;  %v619_v13 = vrot.slane %v54_v10, %v57_v8  ;;  %v621_v14 = vrot.slane %v54_v10, %v61_v9 }
  0xbe   :  { %177 = vrot.lane.b32.xlu1 %v554_v32, %s433_s21  ;;  %vm63_vm5 = vcmp.eq.s32.totalorder %v619_v13, 0  ;;  %vm64_vm6 = vcmp.eq.s32.totalorder %v621_v14, 0  ;;  %vm65_vm7 = vcmp.eq.s32.totalorder %v619_v13, 15  ;;  %vm66_vm8 = vcmp.eq.s32.totalorder %v621_v14, 15 }
  0xbf   :  { %175 = vrot.lane.b32.xlu0 %v559_v37, %s433_s21 }
  0xc2   :  { %193 = vrot.lane.b32.xlu1 %v573_v43, %s432_s2 }
  0xc3   :  { %191 = vrot.lane.b32.xlu0 %v575_v44, %s432_s2 }
  0xc6   :  { %199 = vrot.lane.b32.xlu1 %v573_v43, %s433_s21 }
  0xc7   :  { %197 = vrot.lane.b32.xlu0 %v575_v44, %s433_s21 }
  0xca   :  { %215 = vrot.lane.b32.xlu1 %v589_v53, %s432_s2 }
  0xcb   :  { %213 = vrot.lane.b32.xlu0 %v591_v54, %s432_s2 }
  0xce   :  { %221 = vrot.lane.b32.xlu1 %v589_v53, %s433_s21 }
  0xcf   :  { %219 = vrot.lane.b32.xlu0 %v591_v54, %s433_s21 }
  0xd2   :  { %237 = vrot.lane.b32.xlu1 %v606_v63, %s432_s2 }
  0xd3   :  { %235 = vrot.lane.b32.xlu0 %v608_v0, %s432_s2 }
  0xd6   :  { %243 = vrot.lane.b32.xlu1 %v606_v63, %s433_s21 }
  0xd7   :  { %241 = vrot.lane.b32.xlu0 %v608_v0, %s433_s21 }
 0x124   :  { %v148_v1 = vpop.permute.xlu1 %147 }
 0x125   :  { %v146_v2 = vpop.permute.xlu0 %145 }
 0x126   :  { %v150_v25 = vsel %vm149_vm4, %v146_v2, %v148_v1  ;;  %v151_v26 = vsel %vm149_vm4, %v148_v1, %v146_v2 }
 0x128   :  { %v155_v6 = vpop.permute.xlu1 %154 }
 0x129   :  { %v153_v7 = vpop.permute.xlu0 %152 }
 0x12a   :  { %v157_v18 = vsel %vm156_vm3, %v153_v7, %v155_v6  ;;  %v158_v19 = vsel %vm156_vm3, %v155_v6, %v153_v7 }
 0x12b   :  { %v159_v30 = vsel %vm63_vm5, %v157_v18, %v151_v26  ;;  %v160_v31 = vsel %vm64_vm6, %v158_v19, %v150_v25  ;;  %v161_v46 = vsel %vm65_vm7, %v151_v26, %v157_v18  ;;  %v162_v47 = vsel %vm66_vm8, %v150_v25, %v158_v19 }
 0x12c   :  { %v172_v11 = vpop.permute.xlu1 %171  ;;  %v163_v36 = vadd.f32 %v159_v30, %v532_v22  ;;  %v164_v38 = vadd.f32 %v160_v31, %v529_v21 }
 0x12d   :  { %v170_v12 = vpop.permute.xlu0 %169 }
 0x12e   :  { %v173_v20 = vsel %vm149_vm4, %v170_v12, %v172_v11  ;;  %v174_v23 = vsel %vm149_vm4, %v172_v11, %v170_v12  ;;  %v165_v51 = vadd.f32 %v163_v36, %v161_v46  ;;  %v166_v52 = vadd.f32 %v164_v38, %v162_v47 }
 0x130   :  { %v178_v15 = vpop.permute.xlu1 %177  ;;  %v167_v1 = vmul.f32 0.11111111, %v165_v51  ;;  %v168_v2 = vmul.f32 0.11111111, %v166_v52 }
 0x131   :  { %v176_v16 = vpop.permute.xlu0 %175 }
 0x132   :  { %v179_v4 = vsel %vm156_vm3, %v176_v16, %v178_v15  ;;  %v180_v17 = vsel %vm156_vm3, %v178_v15, %v176_v16  ;;  %v257_v25 = vmul.f32 %v167_v1, %v167_v1  ;;  %v258_v26 = vmul.f32 %v168_v2, %v168_v2 }
 0x133   :  { %v181_v27 = vsel %vm63_vm5, %v179_v4, %v174_v23  ;;  %v182_v28 = vsel %vm64_vm6, %v180_v17, %v173_v20  ;;  %v183_v42 = vsel %vm65_vm7, %v174_v23, %v179_v4  ;;  %v184_v22 = vsel %vm66_vm8, %v173_v20, %v180_v17 }
 0x134   :  { %v194_v24 = vpop.permute.xlu1 %193  ;;  %v185_v33 = vadd.f32 %v181_v27, %v559_v37  ;;  %v186_v34 = vadd.f32 %v182_v28, %v554_v32  ;;  %v269_v13 = vmul.f32 2.0, %v167_v1 }
 0x135   :  { %v192_v29 = vpop.permute.xlu0 %191 }
 0x136   :  { %v195_v40 = vsel %vm149_vm4, %v192_v29, %v194_v24  ;;  %v196_v41 = vsel %vm149_vm4, %v194_v24, %v192_v29  ;;  %v187_v48 = vadd.f32 %v185_v33, %v183_v42  ;;  %v188_v49 = vadd.f32 %v186_v34, %v184_v22 }
 0x138   :  { %v200_v35 = vpop.permute.xlu1 %199  ;;  %v679_v58 = vmul.f32 0.11111111, %v187_v48  ;;  %v681_v59 = vmul.f32 0.11111111, %v188_v49 }
 0x139   :  { %v198_v39 = vpop.permute.xlu0 %197 }
 0x13a   :  { %v201_v37 = vsel %vm156_vm3, %v198_v39, %v200_v35  ;;  %v202_v32 = vsel %vm156_vm3, %v200_v35, %v198_v39  ;;  %v261_v12 = vmul.f32 %v679_v58, %v679_v58  ;;  %v262_v15 = vmul.f32 %v681_v59, %v681_v59 }
 0x13b   :  { %v203_v21 = vsel %vm63_vm5, %v201_v37, %v196_v41  ;;  %v204_v45 = vsel %vm64_vm6, %v202_v32, %v195_v40  ;;  %v205_v60 = vsel %vm65_vm7, %v196_v41, %v201_v37  ;;  %v206_v61 = vsel %vm66_vm8, %v195_v40, %v202_v32 }
 0x13c   :  { %v216_v50 = vpop.permute.xlu1 %215  ;;  %v207_v55 = vadd.f32 %v203_v21, %v575_v44  ;;  %v208_v56 = vadd.f32 %v204_v45, %v573_v43  ;;  %v281_v29 = vadd.f32 %v261_v12, %v257_v25  ;;  %v282_v30 = vadd.f32 %v262_v15, %v258_v26 }
 0x13d   :  { %v214_v57 = vpop.permute.xlu0 %213 }
 0x13e   :  { %v209_v3 = vadd.f32 %v207_v55, %v205_v60  ;;  %v210_v6 = vadd.f32 %v208_v56, %v206_v61  ;;  %v217_v43 = vsel %vm149_vm4, %v214_v57, %v216_v50  ;;  %v218_v44 = vsel %vm149_vm4, %v216_v50, %v214_v57 }
 0x13f   :  { %v283_v47 = vadd.f32 0.0001, %v281_v29  ;;  %v284_v48 = vadd.f32 0.0001, %v282_v30  ;;  %v265_v56 = vmul.f32 %v679_v58, %v167_v1  ;;  %v266_v57 = vmul.f32 %v681_v59, %v168_v2 }
 0x140   :  { %v222_v62 = vpop.permute.xlu1 %221  ;;  %v211_v18 = vmul.f32 0.11111111, %v209_v3  ;;  %v212_v19 = vmul.f32 0.11111111, %v210_v6  ;;  %v270_v6 = vmul.f32 2.0, %v168_v2 }
 0x141   :  { %v220_v7 = vpop.permute.xlu0 %219 }
 0x142   :  { %v223_v8 = vsel %vm156_vm3, %v220_v7, %v222_v62  ;;  %v224_v9 = vsel %vm156_vm3, %v222_v62, %v220_v7  ;;  %v260_v34 = vsub.f32 %v212_v19, %v258_v26 }
 0x143   :  { %v225_v10 = vsel %vm63_vm5, %v223_v8, %v218_v44  ;;  %v226_v11 = vsel %vm64_vm6, %v224_v9, %v217_v43  ;;  %v227_v20 = vsel %vm65_vm7, %v218_v44, %v223_v8  ;;  %v228_v23 = vsel %vm66_vm8, %v217_v43, %v224_v9 }
 0x144   :  { %v229_v16 = vadd.f32 %v225_v10, %v591_v54  ;;  %v230_v4 = vadd.f32 %v226_v11, %v589_v53  ;;  %v238_v17 = vpop.permute.xlu1 %237  ;;  %v259_v53 = vsub.f32 %v211_v18, %v257_v25  ;;  %v271_v43 = vmul.f32 %v269_v13, %v679_v58 }
 0x145   :  { %v236_v24 = vpop.permute.xlu0 %235  ;;  %v272_v44 = vmul.f32 %v270_v6, %v681_v59 }
 0x146   :  { %v231_v27 = vadd.f32 %v229_v16, %v227_v20  ;;  %v232_v28 = vadd.f32 %v230_v4, %v228_v23  ;;  %v239_v35 = vsel %vm149_vm4, %v236_v24, %v238_v17  ;;  %v240_v36 = vsel %vm149_vm4, %v238_v17, %v236_v24 }
 0x147   :  { %v273_v10 = vadd.f32 0.0001, %v271_v43  ;;  %v274_v11 = vadd.f32 0.0001, %v272_v44 }
 0x148   :  { %v233_v31 = vmul.f32 0.11111111, %v231_v27  ;;  %v234_v54 = vmul.f32 0.11111111, %v232_v28  ;;  %v244_v33 = vpop.permute.xlu1 %243 }
 0x149   :  { %v242_v38 = vpop.permute.xlu0 %241 }
 0x14a   :  { %v263_v39 = vsub.f32 %v233_v31, %v261_v12  ;;  %v264_v40 = vsub.f32 %v234_v54, %v262_v15  ;;  %v245_v41 = vsel %vm156_vm3, %v242_v38, %v244_v33  ;;  %v246_v37 = vsel %vm156_vm3, %v244_v33, %v242_v38 }
 0x14b   :  { %v247_v32 = vsel %vm63_vm5, %v245_v41, %v240_v36  ;;  %v248_v42 = vsel %vm64_vm6, %v246_v37, %v239_v35  ;;  %v249_v49 = vsel %vm65_vm7, %v240_v36, %v245_v41  ;;  %v250_v5 = vsel %vm66_vm8, %v239_v35, %v246_v37 }
 0x14c   :  { %v285_v22 = vadd.f32 %v263_v39, %v259_v53  ;;  %v286_v21 = vadd.f32 %v264_v40, %v260_v34  ;;  %v251_v45 = vadd.f32 %v247_v32, %v608_v0  ;;  %v252_v46 = vadd.f32 %v248_v42, %v606_v63 }
 0x14e   :  { %v287_v50 = vadd.f32 0.0009, %v285_v22  ;;  %v288_v51 = vadd.f32 0.0009, %v286_v21  ;;  %v253_v52 = vadd.f32 %v251_v45, %v249_v49  ;;  %v254_v55 = vadd.f32 %v252_v46, %v250_v5 }
 0x150   :  { %v289_v60 = vmul.f32 %v287_v50, %v283_v47  ;;  %v290_v0 = vmul.f32 %v288_v51, %v284_v48  ;;  %v255_v61 = vmul.f32 0.11111111, %v253_v52  ;;  %v256_v63 = vmul.f32 0.11111111, %v254_v55 }
 0x152   :  { %329 = vrcp.f32 %v289_v60  ;;  %v267_v62 = vsub.f32 %v255_v61, %v265_v56  ;;  %v268_v3 = vsub.f32 %v256_v63, %v266_v57 }
 0x153   :  { %331 = vrcp.f32 %v290_v0 }
 0x154   :  { %v275_v14 = vmul.f32 2.0, %v267_v62  ;;  %v276_v7 = vmul.f32 2.0, %v268_v3 }
 0x156   :  { %v277_v8 = vadd.f32 0.0009, %v275_v14  ;;  %v278_v9 = vadd.f32 0.0009, %v276_v7 }
 0x158   :  { %v279_v12 = vmul.f32 %v277_v8, %v273_v10  ;;  %v280_v16 = vmul.f32 %v278_v9, %v274_v11 }
 0x15c   :  { %v330_v15 = vpop.eup %329 }
 0x15d   :  { %v332_v4 = vpop.eup %331  ;;  %v293_v17 = vmul.f32 %v330_v15, %v279_v12 }
 0x15e   :  { %v294_v18 = vmul.f32 %v332_v4, %v280_v16 }
 0x15f   :  { %v295_v19 = vsub.f32 1.0, %v293_v17 }
 0x160   :  { %v296_v1 = vsub.f32 1.0, %v294_v18 }
 0x161   :  { %v297_v20 = vmul.f32 0.5, %v295_v19 }
 0x162   :  { %v298_v2 = vmul.f32 0.5, %v296_v1 }
 0x163   :  { %v299_v23 = vmax.f32 %v297_v20, 0.0 }
 0x164   :  { %v300_v58 = vmax.f32 %v298_v2, 0.0 }
 0x165   :  { %v301_v24 = vmin.f32 %v299_v23, 1.0 }
 0x166   :  { %v302_v59 = vmin.f32 %v300_v58, 1.0 }
 0x167   :  { %303 = vst [vmem:[#allocation8] sm:$0xff] %v301_v24 }
 0x168   :  { %304 = vst [vmem:[#allocation8 + $0x8] sm:$0xff] %v302_v59 }
 0x169   :  { %410 = shalt.err (!%p407_p0)
}
 0x16a   :  { %s411_s27 = scalar_lea.hbm %s746_s3, 256 }
 0x16b   :  { %p412_p1 = scmp.ne.s32.totalorder %s746_s3, %s411_s27  ;;  %p415_p2 = scmp.lt.u32.totalorder %s411_s27, %s746_s3 }
 0x16d   :  { %p417_p3 = pnand %p415_p2, %p412_p1 }
 0x16f   :  { %420 = shalt.err (!%p417_p3)
}
 0x170   :  { %314 = dma.vmem_to_hbm [thread:$0]  %s312_s23, 256, %s746_s3, [#allocation4]  }
 0x171   :  { %425 = dma.done.wait [#allocation4], 256  }
 0x172   :  { %426 = vsyncadd [#allocation4], 4294967040 }
 0x173   :  { %318 = vsyncpa [#allocation3], 1 }
 0x174   :  { %319 = vsyncpa [#allocation6], 1 }
 0x175   :  { %320 = vsyncpa [#allocation4], 1 }

</bundles_post_ra>
